<compile_context>
chip_gen: v5e
topology: v5e:2x2
jax: 0.10.0
libtpu: 0.0.40
codegen_flags: <defaults>
</compile_context>

<pallas_src>
import functools

import jax
import jax.numpy as jnp
from jax import lax
from jax.experimental import pallas as pl
from jax.experimental.pallas import tpu as pltpu


_CLASS_UNROLL_LIMIT = 32   # fully unroll the class loops up to this many classes
_CLASS_FORI_UNROLL = 8     # partial unroll for the fori-based class loops (large C)


def _round_down(x, m):
    return (x // m) * m


def _fold_rows(acc, weighted, sub_rows):
    """Fold a (sub_rows, 128) f32 strip into the (8, 128) accumulator."""
    full = sub_rows // 8
    for k in range(full):                                 # pure VPU adds, sublane-aligned slices
        acc = acc + weighted[k * 8:(k + 1) * 8, :]
    rem = sub_rows - full * 8
    if rem:                                               # only hit when the whole image has < 8 rows
        tail_sum = jnp.sum(weighted[full * 8:, :], axis=0, keepdims=True)   # (1, 128)
        row0 = lax.broadcasted_iota(jnp.int32, (8, 128), 0) == 0
        acc = acc + jnp.where(row0, tail_sum, 0.0)
    return acc


def _uace_kernel(logits_ref, tgt_ref, unc_ref, out_ref, *,
                 ignore_index, num_classes, sub_rows, n_sub, tile_rows,
                 valid_rows, mask_tail):
    """Weighted-CE partial sums for one (batch, pixel-chunk) block.

    logits_ref: (1, C, TILE, 128)  logits in native dtype, classes on a short leading axis
    tgt_ref:    (1, TILE, 128)     int32 targets
    unc_ref:    (1, TILE, 128)     uncertainty masks
    out_ref:    (1, 1, 8, 128)     f32 partial-sum slot, unique per (batch, chunk) grid point
    """
    t = pl.program_id(1)
    row_base = t * tile_rows

    if mask_tail:   # static: only emitted when the last grid block has out-of-bounds rows
        sub_iota = lax.broadcasted_iota(jnp.int32, (sub_rows, 128), 0)

    def chunk(j, acc):
        start = j * sub_rows
        if sub_rows % 8 == 0:
            start = pl.multiple_of(start, 8)
        rows = pl.ds(start, sub_rows)

        tgt = tgt_ref[0, rows, :]                         # (sub, 128) int32

        # ---- pass 1: running max + target-logit select, native dtype, one load per class ----
        r0 = logits_ref[0, 0, rows, :]
        m = r0
        x_t = jnp.where(tgt == 0, r0, jnp.zeros_like(r0))
        if num_classes <= _CLASS_UNROLL_LIMIT:
            for c in range(1, num_classes):
                rc = logits_ref[0, c, rows, :]
                m = jnp.maximum(m, rc)
                x_t = jnp.where(tgt == c, rc, x_t)
        else:
            def p1(c, carry):
                m_, xt_ = carry
                rc = logits_ref[0, c, rows, :]
                return jnp.maximum(m_, rc), jnp.where(tgt == c, rc, xt_)
            m, x_t = lax.fori_loop(1, num_classes, p1, (m, x_t),
                                   unroll=_CLASS_FORI_UNROLL)

        m32 = m.astype(jnp.float32)                       # single cast of the max

        # ---- pass 2: sum of exp; body is just load + cast + sub + exp + add ----
        s0 = jnp.zeros((sub_rows, 128), jnp.float32)
        if num_classes <= _CLASS_UNROLL_LIMIT:
            s = s0
            for c in range(num_classes):
                s = s + jnp.exp(logits_ref[0, c, rows, :].astype(jnp.float32) - m32)
        else:
            def p2(c, s_):
                return s_ + jnp.exp(logits_ref[0, c, rows, :].astype(jnp.float32) - m32)
            s = lax.fori_loop(0, num_classes, p2, s0, unroll=_CLASS_FORI_UNROLL)

        lse = m32 + jnp.log(s)                            # stable log-sum-exp
        ce = lse - x_t.astype(jnp.float32)

        unc = unc_ref[0, rows, :].astype(jnp.float32)
        w = 1.0 + unc

        valid = tgt != ignore_index
        if mask_tail:                                     # mask rows past the real pixel extent
            valid = valid & ((row_base + start) + sub_iota < valid_rows)
        weighted = jnp.where(valid, ce * (w * w), 0.0)    # (sub, 128)

        return _fold_rows(acc, weighted, sub_rows)

    acc = lax.fori_loop(0, n_sub, chunk, jnp.zeros((8, 128), jnp.float32))
    out_ref[0, 0] = acc


def uncertainty_aware_cross_entropy_loss(inputs, targets, uncertainty_masks,
                                         ignore_index=255,
                                         max_tile_rows=2048, sub_rows=32,
                                         vmem_budget_bytes=None):
    """inputs: (N, C, H, W) float; targets: (N, H, W) int; uncertainty_masks: (N, H, W) float."""
    n, c, h, w = inputs.shape
    hw = h * w
    if hw % 128 != 0:
        # TODO(synk): support H*W that is not a multiple of 128 via in-kernel lane masking.
        raise ValueError("H*W must be a multiple of 128 for this kernel")
    r = hw // 128                                         # rows of 128 pixels per image

    # ---- per-generation VMEM budget (v7x has only 64 MiB physical vs 128 MiB on v5e/v6e) ----
    try:
        vmem_cap = int(pltpu.get_tpu_info().vmem_capacity_bytes)
    except Exception:
        vmem_cap = 64 << 20                               # conservative (v7x-sized) fallback
    if vmem_budget_bytes is None:
        vmem_budget_bytes = min(vmem_cap * 3 // 8, 32 << 20)   # ~24 MiB v7x, 32 MiB v5e/v6e

    # ---- tile sizing: NO host-side padding of the logits, ever ----
    bytes_per_row = 2 * 128 * (c * inputs.dtype.itemsize          # x2 = double-buffered logits
                               + 4                                 # int32 targets
                               + uncertainty_masks.dtype.itemsize)  # uncertainty
    if r < 8:
        sub = tile = r                                    # block equals the full pixel extent
    else:
        sub = max(8, _round_down(min(sub_rows, _round_down(r, 8)), 8))
        tile = min(max_tile_rows, vmem_budget_bytes // bytes_per_row, r)
        tile = max(sub, _round_down(tile, sub))           # multiple of sub, <= r
    n_inner = -(-r // tile)                               # ceil-div; last block may be partial
    mask_tail = (r % tile) != 0                           # partial block handled in-kernel

    # free, contiguous lane-dense views: no transpose, no cast, no jnp.pad of the big tensor
    logits = inputs.reshape(n, c, r, 128)
    tgt = targets.reshape(n, r, 128)
    if tgt.dtype != jnp.int32:
        tgt = tgt.astype(jnp.int32)
    unc = uncertainty_masks.reshape(n, r, 128)
    # NOTE(v5e): tgt/unc could be narrowed (int16 / bf16) on the host to shave HBM bytes on the
    # most bandwidth-bound generation, but bf16 uncertainty changes the loss numerics slightly,
    # so it is intentionally left in the caller's dtype by default.

    kernel = functools.partial(
        _uace_kernel, ignore_index=ignore_index, num_classes=c,
        sub_rows=sub, n_sub=tile // sub, tile_rows=tile,
        valid_rows=r, mask_tail=mask_tail)

    # explicit VMEM limit so large tiles also work under v5e's 16 MiB scoped default,
    # while staying well under v7x's 64 MiB physical capacity.
    ws_bytes = tile * bytes_per_row + 4 * (8 * 128 * 4)
    vmem_limit = int(min(vmem_cap // 2, max(32 << 20, ws_bytes + (6 << 20))))

    partials = pl.pallas_call(
        kernel,
        out_shape=jax.ShapeDtypeStruct((n, n_inner, 8, 128), jnp.float32),
        grid_spec=pltpu.PrefetchScalarGridSpec(
            num_scalar_prefetch=0,
            grid=(n, n_inner),                            # both axes fully parallel (v7x megacore)
            in_specs=[
                pl.BlockSpec((1, c, tile, 128), lambda b, t: (b, 0, t, 0)),
                pl.BlockSpec((1, tile, 128), lambda b, t: (b, t, 0)),
                pl.BlockSpec((1, tile, 128), lambda b, t: (b, t, 0)),
            ],
            out_specs=pl.BlockSpec((1, 1, 8, 128), lambda b, t: (b, t, 0, 0)),
        ),
        compiler_params=pltpu.CompilerParams(
            dimension_semantics=("parallel", "parallel"),
            vmem_limit_bytes=vmem_limit),
    )(logits, tgt, unc)

    # .mean() in the reference is over ALL pixels (ignored pixels contribute 0 to the sum).
    return jnp.sum(partials, dtype=jnp.float32) / jnp.float32(n * hw)


if __name__ == "__main__":
    key = jax.random.PRNGKey(0)
    k1, k2, k3, k4 = jax.random.split(key, 4)

    N, C, H, W = 2, 4, 16, 16
    inputs = jax.random.normal(k1, (N, C, H, W), dtype=jnp.float32)
    targets = jax.random.randint(k2, (N, H, W), 0, C, dtype=jnp.int32)
    # sprinkle some ignore_index pixels
    ignore_mask = jax.random.uniform(k3, (N, H, W)) < 0.1
    targets = jnp.where(ignore_mask, 255, targets)
    uncertainty = jax.random.uniform(k4, (N, H, W), dtype=jnp.float32)

    loss = uncertainty_aware_cross_entropy_loss(inputs, targets, uncertainty)
    loss = jax.block_until_ready(loss)

    # pure-JAX reference check
    logits_ref = jnp.transpose(inputs, (0, 2, 3, 1)).reshape(-1, C)
    tgt_ref = targets.reshape(-1)
    unc_ref = uncertainty.reshape(-1)
    logp = jax.nn.log_softmax(logits_ref, axis=-1)
    safe_tgt = jnp.where(tgt_ref == 255, 0, tgt_ref)
    ce_ref = -jnp.take_along_axis(logp, safe_tgt[:, None], axis=-1)[:, 0]
    ce_ref = jnp.where(tgt_ref == 255, 0.0, ce_ref)
    loss_ref = jnp.mean(ce_ref * (1.0 + unc_ref) ** 2)

    assert jnp.allclose(loss, loss_ref, rtol=1e-5, atol=1e-5), (loss, loss_ref)
    print("KERNEL_OK")
</pallas_src>

<mosaic_0001>
module attributes {stable_mosaic.version = 11 : i64} {
  func.func @_uace_kernel(%arg0: i32, %arg1: i32, %arg2: memref<1x4x2x128xf32, #tpu.memory_space<vmem>>, %arg3: memref<1x2x128xi32, #tpu.memory_space<vmem>>, %arg4: memref<1x2x128xf32, #tpu.memory_space<vmem>>, %arg5: memref<1x1x8x128xf32, #tpu.memory_space<vmem>>) attributes {dimension_semantics = [#tpu.dimension_semantics<parallel>, #tpu.dimension_semantics<parallel>], iteration_bounds = array<i64: 2, 1>, scalar_prefetch = 0 : i64, scratch_operands = 0 : i64, tpu.core_type = #tpu.core_type<tc>, window_params = [{transform_indices = @transform_0, window_bounds = array<i64: 1, 4, 2, 128>}, {transform_indices = @transform_1, window_bounds = array<i64: 1, 2, 128>}, {transform_indices = @transform_2, window_bounds = array<i64: 1, 2, 128>}, {transform_indices = @transform_3, window_bounds = array<i64: 1, 1, 8, 128>}]} {
    %cst = arith.constant 0.000000e+00 : f32
    %0 = vector.broadcast %cst : f32 to vector<8x128xf32>
    %c0_i32 = arith.constant 0 : i32
    %c2_i32 = arith.constant 2 : i32
    %1 = arith.muli %c0_i32, %c2_i32 : i32
    %c0 = arith.constant 0 : index
    %2 = arith.index_cast %1 : i32 to index
    %c0_0 = arith.constant 0 : index
    %3 = vector.load %arg3[%c0, %2, %c0_0] : memref<1x2x128xi32, #tpu.memory_space<vmem>>, vector<1x2x128xi32>
    %4 = vector.shape_cast %3 : vector<1x2x128xi32> to vector<2x128xi32>
    %c0_1 = arith.constant 0 : index
    %c0_2 = arith.constant 0 : index
    %5 = arith.index_cast %1 : i32 to index
    %c0_3 = arith.constant 0 : index
    %6 = vector.load %arg2[%c0_1, %c0_2, %5, %c0_3] : memref<1x4x2x128xf32, #tpu.memory_space<vmem>>, vector<1x1x2x128xf32>
    %7 = vector.shape_cast %6 : vector<1x1x2x128xf32> to vector<2x128xf32>
    %c0_i32_4 = arith.constant 0 : i32
    %8 = vector.broadcast %c0_i32_4 : i32 to vector<2x128xi32>
    %9 = arith.cmpi eq, %4, %8 : vector<2x128xi32>
    %cst_5 = arith.constant 0.000000e+00 : f32
    %10 = vector.broadcast %cst_5 : f32 to vector<2x128xf32>
    %11 = arith.select %9, %7, %10 : vector<2x128xi1>, vector<2x128xf32>
    %c0_6 = arith.constant 0 : index
    %c1 = arith.constant 1 : index
    %12 = arith.index_cast %1 : i32 to index
    %c0_7 = arith.constant 0 : index
    %13 = vector.load %arg2[%c0_6, %c1, %12, %c0_7] : memref<1x4x2x128xf32, #tpu.memory_space<vmem>>, vector<1x1x2x128xf32>
    %14 = vector.shape_cast %13 : vector<1x1x2x128xf32> to vector<2x128xf32>
    %15 = arith.maximumf %7, %14 : vector<2x128xf32>
    %c1_i32 = arith.constant 1 : i32
    %16 = vector.broadcast %c1_i32 : i32 to vector<2x128xi32>
    %17 = arith.cmpi eq, %4, %16 : vector<2x128xi32>
    %18 = arith.select %17, %14, %11 : vector<2x128xi1>, vector<2x128xf32>
    %c0_8 = arith.constant 0 : index
    %c2 = arith.constant 2 : index
    %19 = arith.index_cast %1 : i32 to index
    %c0_9 = arith.constant 0 : index
    %20 = vector.load %arg2[%c0_8, %c2, %19, %c0_9] : memref<1x4x2x128xf32, #tpu.memory_space<vmem>>, vector<1x1x2x128xf32>
    %21 = vector.shape_cast %20 : vector<1x1x2x128xf32> to vector<2x128xf32>
    %22 = arith.maximumf %15, %21 : vector<2x128xf32>
    %c2_i32_10 = arith.constant 2 : i32
    %23 = vector.broadcast %c2_i32_10 : i32 to vector<2x128xi32>
    %24 = arith.cmpi eq, %4, %23 : vector<2x128xi32>
    %25 = arith.select %24, %21, %18 : vector<2x128xi1>, vector<2x128xf32>
    %c0_11 = arith.constant 0 : index
    %c3 = arith.constant 3 : index
    %26 = arith.index_cast %1 : i32 to index
    %c0_12 = arith.constant 0 : index
    %27 = vector.load %arg2[%c0_11, %c3, %26, %c0_12] : memref<1x4x2x128xf32, #tpu.memory_space<vmem>>, vector<1x1x2x128xf32>
    %28 = vector.shape_cast %27 : vector<1x1x2x128xf32> to vector<2x128xf32>
    %29 = arith.maximumf %22, %28 : vector<2x128xf32>
    %c3_i32 = arith.constant 3 : i32
    %30 = vector.broadcast %c3_i32 : i32 to vector<2x128xi32>
    %31 = arith.cmpi eq, %4, %30 : vector<2x128xi32>
    %32 = arith.select %31, %28, %25 : vector<2x128xi1>, vector<2x128xf32>
    %cst_13 = arith.constant 0.000000e+00 : f32
    %33 = vector.broadcast %cst_13 : f32 to vector<2x128xf32>
    %c0_14 = arith.constant 0 : index
    %c0_15 = arith.constant 0 : index
    %34 = arith.index_cast %1 : i32 to index
    %c0_16 = arith.constant 0 : index
    %35 = vector.load %arg2[%c0_14, %c0_15, %34, %c0_16] : memref<1x4x2x128xf32, #tpu.memory_space<vmem>>, vector<1x1x2x128xf32>
    %36 = vector.shape_cast %35 : vector<1x1x2x128xf32> to vector<2x128xf32>
    %37 = arith.subf %36, %29 : vector<2x128xf32>
    %38 = math.exp %37 : vector<2x128xf32>
    %39 = arith.addf %33, %38 : vector<2x128xf32>
    %c0_17 = arith.constant 0 : index
    %c1_18 = arith.constant 1 : index
    %40 = arith.index_cast %1 : i32 to index
    %c0_19 = arith.constant 0 : index
    %41 = vector.load %arg2[%c0_17, %c1_18, %40, %c0_19] : memref<1x4x2x128xf32, #tpu.memory_space<vmem>>, vector<1x1x2x128xf32>
    %42 = vector.shape_cast %41 : vector<1x1x2x128xf32> to vector<2x128xf32>
    %43 = arith.subf %42, %29 : vector<2x128xf32>
    %44 = math.exp %43 : vector<2x128xf32>
    %45 = arith.addf %39, %44 : vector<2x128xf32>
    %c0_20 = arith.constant 0 : index
    %c2_21 = arith.constant 2 : index
    %46 = arith.index_cast %1 : i32 to index
    %c0_22 = arith.constant 0 : index
    %47 = vector.load %arg2[%c0_20, %c2_21, %46, %c0_22] : memref<1x4x2x128xf32, #tpu.memory_space<vmem>>, vector<1x1x2x128xf32>
    %48 = vector.shape_cast %47 : vector<1x1x2x128xf32> to vector<2x128xf32>
    %49 = arith.subf %48, %29 : vector<2x128xf32>
    %50 = math.exp %49 : vector<2x128xf32>
    %51 = arith.addf %45, %50 : vector<2x128xf32>
    %c0_23 = arith.constant 0 : index
    %c3_24 = arith.constant 3 : index
    %52 = arith.index_cast %1 : i32 to index
    %c0_25 = arith.constant 0 : index
    %53 = vector.load %arg2[%c0_23, %c3_24, %52, %c0_25] : memref<1x4x2x128xf32, #tpu.memory_space<vmem>>, vector<1x1x2x128xf32>
    %54 = vector.shape_cast %53 : vector<1x1x2x128xf32> to vector<2x128xf32>
    %55 = arith.subf %54, %29 : vector<2x128xf32>
    %56 = math.exp %55 : vector<2x128xf32>
    %57 = arith.addf %51, %56 : vector<2x128xf32>
    %58 = math.log %57 : vector<2x128xf32>
    %59 = arith.addf %29, %58 : vector<2x128xf32>
    %60 = arith.subf %59, %32 : vector<2x128xf32>
    %c0_26 = arith.constant 0 : index
    %61 = arith.index_cast %1 : i32 to index
    %c0_27 = arith.constant 0 : index
    %62 = vector.load %arg4[%c0_26, %61, %c0_27] : memref<1x2x128xf32, #tpu.memory_space<vmem>>, vector<1x2x128xf32>
    %63 = vector.shape_cast %62 : vector<1x2x128xf32> to vector<2x128xf32>
    %cst_28 = arith.constant 1.000000e+00 : f32
    %64 = vector.broadcast %cst_28 : f32 to vector<2x128xf32>
    %65 = arith.addf %64, %63 : vector<2x128xf32>
    %c255_i32 = arith.constant 255 : i32
    %66 = vector.broadcast %c255_i32 : i32 to vector<2x128xi32>
    %67 = arith.cmpi ne, %4, %66 : vector<2x128xi32>
    %68 = arith.mulf %65, %65 : vector<2x128xf32>
    %69 = arith.mulf %60, %68 : vector<2x128xf32>
    %cst_29 = arith.constant 0.000000e+00 : f32
    %70 = vector.broadcast %cst_29 : f32 to vector<2x128xf32>
    %71 = arith.select %67, %69, %70 : vector<2x128xi1>, vector<2x128xf32>
    %cst_30 = arith.constant dense<0.000000e+00> : vector<128xf32>
    %72 = vector.multi_reduction <add>, %71, %cst_30 [0] : vector<2x128xf32> to vector<128xf32>
    %73 = vector.shape_cast %72 : vector<128xf32> to vector<1x128xf32>
    %74 = tpu.iota {dimensions = array<i32: 0>} : vector<8x128xi32>
    %c0_i32_31 = arith.constant 0 : i32
    %75 = vector.broadcast %c0_i32_31 : i32 to vector<8x128xi32>
    %76 = arith.cmpi eq, %74, %75 : vector<8x128xi32>
    %cst_32 = arith.constant 0.000000e+00 : f32
    %77 = vector.shape_cast %73 : vector<1x128xf32> to vector<1x128xf32>
    %78 = vector.broadcast %77 : vector<1x128xf32> to vector<8x128xf32>
    %79 = vector.broadcast %cst_32 : f32 to vector<8x128xf32>
    %80 = arith.select %76, %78, %79 : vector<8x128xi1>, vector<8x128xf32>
    %81 = arith.addf %0, %80 : vector<8x128xf32>
    %c1_i32_33 = arith.constant 1 : i32
    %c0_34 = arith.constant 0 : index
    %c0_35 = arith.constant 0 : index
    %c0_36 = arith.constant 0 : index
    %c0_37 = arith.constant 0 : index
    %82 = vector.load %arg5[%c0_34, %c0_35, %c0_36, %c0_37] : memref<1x1x8x128xf32, #tpu.memory_space<vmem>>, vector<1x1x8x128xf32>
    %83 = vector.shape_cast %82 : vector<1x1x8x128xf32> to vector<8x128xf32>
    %84 = vector.shape_cast %81 : vector<8x128xf32> to vector<1x1x8x128xf32>
    tpu.vector_store %arg5[%c0_34, %c0_35, %c0_36, %c0_37], %84 {strides = array<i32>} : memref<1x1x8x128xf32, #tpu.memory_space<vmem>>, vector<1x1x8x128xf32>,
    return
  }
  func.func @transform_0(%arg0: i32, %arg1: i32) -> (i32, i32, i32, i32) {
    %c0_i32 = arith.constant 0 : i32
    %c0_i32_0 = arith.constant 0 : i32
    %c0_i32_1 = arith.constant 0 : i32
    return %arg0, %c0_i32, %arg1, %c0_i32_0 : i32, i32, i32, i32
  }
  func.func @transform_1(%arg0: i32, %arg1: i32) -> (i32, i32, i32) {
    %c0_i32 = arith.constant 0 : i32
    %c0_i32_0 = arith.constant 0 : i32
    return %arg0, %arg1, %c0_i32 : i32, i32, i32
  }
  func.func @transform_2(%arg0: i32, %arg1: i32) -> (i32, i32, i32) {
    %c0_i32 = arith.constant 0 : i32
    %c0_i32_0 = arith.constant 0 : i32
    return %arg0, %arg1, %c0_i32 : i32, i32, i32
  }
  func.func @transform_3(%arg0: i32, %arg1: i32) -> (i32, i32, i32, i32) {
    %c0_i32 = arith.constant 0 : i32
    %c0_i32_0 = arith.constant 0 : i32
    %c0_i32_1 = arith.constant 0 : i32
    return %arg0, %arg1, %c0_i32, %c0_i32_0 : i32, i32, i32, i32
  }
}

</mosaic_0001>

<bundles_post_ra>
// kernel: tpu_custom_call.1
= control target key start
LH: loop header
LB: loop body
LE: loop exit
PB: predicated region body
PF: predicated region fallthrough
CT: control target
= control target key end

     0   :  { %s970_s0 = inlined_call_operand.hbm [shape: f32[2,4,2,128], index: 0, kind: input, shape index: {}]   ;;  %s971_s1 = inlined_call_operand.hbm [shape: s32[2,2,128], index: 1, kind: input, shape index: {}]   ;;  %s972_s2 = inlined_call_operand.hbm [shape: f32[2,2,128], index: 2, kind: input, shape index: {}]   ;;  %s973_s3 = inlined_call_operand.hbm [shape: f32[2,1,8,128], index: 3, kind: output, shape index: {}]  }
   0x1   :  { %977 = sst [smem:[#allocation15_spill]] %s971_s1 }
   0x2   :  { %978 = sst [smem:[#allocation16_spill]] %s972_s2 }
   0x3   :  { %8 = vsyncpa [#allocation3], 0 }
   0x4   :  { %10 = vsyncpa [#allocation3 + $0x1], 0 }
   0x5   :  { %11 = vsyncpa [#allocation6], 0 }
   0x6   :  { %13 = vsyncpa [#allocation6 + $0x1], 0 }
   0x7   :  { %14 = vsyncpa [#allocation4], 0 }
   0x8   :  { %16 = vsyncpa [#allocation4 + $0x1], 0  ;;  %s799_s12 = smov 0   ;;  %s801_s13 = smov 0  }
   0x9   :  { %s803_s14 = smov 0   ;;  %s805_s15 = smov 0  }
   0xa   :  { %s807_s16 = smov 0   ;;  %s809_s17 = smov 0  }
   0xb LB: > { %979 = sst [smem:[#allocation12_spill]] %s763_s14  ;;  %s830_s18 = sadd.s32 4294967295, %s775_s17   ;;  %s775_s17 = sphi %s809_s17, %s22_s17   ;;  %s771_s16 = sphi %s807_s16, %s997_s16   ;;  %s767_s15 = sphi %s805_s15, %s996_s15   ;;  %s763_s14 = sphi %s803_s14, %s992_s14   ;;  %s759_s13 = sphi %s801_s13, %s995_s13   ;;  %s755_s12 = sphi %s799_s12, %s994_s12  }
   0xc   : > { %s492_s19 = sadd.s32 4294967294, %s775_s17   ;;  %s34_s20 = sadd.s32 1, %s771_s16 }
   0xd   : > { %s43_s21 = sadd.s32 1, %s763_s14  ;;  %p36_p0 = scmp.ge.s32.totalorder %s34_s20, 2 }
   0xe   : > { %p50_p1 = scmp.ne.s32.totalorder %s763_s14, %s759_s13  ;;  %p51_p2 = scmp.eq.s32.totalorder %s775_s17, 0 }
   0xf   : > { %p56_p3 = scmp.ne.s32.totalorder %s759_s13, %s755_s12  ;;  %s999_s20 = smov (%p36_p0, %s34_s20), 0 }
  0x10   : > { %980 = sst [smem:[#allocation13_spill]] %s999_s20  ;;  %p842_p4 = por %p51_p2, %p50_p1 }
  0x11   : > { %p57_p5 = scmp.eq.s32.totalorder %s830_s18, 0  ;;  %s38_s23 = ssub.s32 %s771_s16, %s999_s20 }
  0x12   : > { %p138_p6 = scmp.eq.s32.totalorder %s830_s18, 1  ;;  %p41_p7 = scmp.eq.s32.totalorder %s38_s23, 0 }
  0x13   : > { %p850_p8 = por %p57_p5, %p56_p3  ;;  %p144_p10 = scmp.eq.s32.totalorder %s492_s19, 1 }
  0x14   : > { %p854_p9 = por %p138_p6, %p50_p1  ;;  %p494_p12 = scmp.ge.s32.totalorder %s775_s17, 2 }
  0x15   : > { %s859_s26 = scalar_select %p41_p7, %s763_s14, %s43_s21  }
  0x16   : > { %p861_p11 = por %p144_p10, %p56_p3  ;;  %p537_p13 = scmp.lt.s32.totalorder %s775_s17, 2 }
  0x17   : > { %984 = sst [smem:[#allocation14_spill]] %s859_s26  ;;  %s868_s28 = sand.u32 1, %s763_s14  }
  0x18   : > { %s187_s29 = sand.u32 1, %s775_s17   ;;  %s974_s30 = sshll.u32 %s868_s28, 1 }
  0x19   : > { %p874_p0 = pnand %p537_p13, %p842_p4  ;;  %s499_s5 = sshll.u32 %s771_s16, 1 }
  0x1a   : > { %s987_s1 = sld [smem:[#allocation15_spill]]  ;;  %s191_s10 = scalar_lea.vmem [#allocation5], %s974_s30 }
  0x1b   : > { %s200_s11 = sshll.u32 %s191_s10, 4  ;;  %s188_s19 = scalar_lea.sflag [#allocation6], %s187_s29  ;;  %s201_s11 = int_to_ptr.vmem [resolvable:$true] %s200_s11 }
  0x1c   : > { %s988_s2 = sld [smem:[#allocation16_spill]]  ;;  %p502_p1 = scmp.ge.s32.totalorder %s775_s17, 1 }
  0x1d   : > { %p225_p2 = scmp.lt.s32.totalorder %s775_s17, 3  ;;  %s495_s7 = sshll.u32 %s868_s28, 3 }
  0x1e   : > { %s777_s21 = smov 32   ;;  %s778_s22 = smov 2  }
  0x1f   : > { %p891_p3 = pnand %p502_p1, %p225_p2  ;;  %s990_s20 = sshll.u32 %s868_s28, 1 }
  0x20   : > { %s196_s8 = scalar_lea.hbm %s987_s1, %s499_s5  ;;  %s211_s26 = scalar_lea.vmem [#allocation7], %s990_s20 }
  0x21   : > { %s198_s9 = sshll.u32 %s196_s8, 4  ;;  %s514_s8 = sshll.u32 %s771_s16, 3  ;;  %s199_s9 = int_to_ptr.hbm [resolvable:$true] %s198_s9 }
  0x22   : > { %529 = dma.hbm_to_vmem [thread:$0]  (!%p874_p0), %s199_s9, 32, %s201_s11, %s188_s19  }
  0x23   : > { %s216_s23 = scalar_lea.hbm %s988_s2, %s499_s5  ;;  %s174_s29 = scalar_lea.hbm %s970_s0, %s514_s8 }
  0x24   : > { %s175_s9 = sshll.u32 %s174_s29, 4  ;;  %s168_s11 = scalar_lea.vmem [#allocation2], %s495_s7  ;;  %s176_s9 = int_to_ptr.hbm [resolvable:$true] %s175_s9 }
  0x25   : > { %s177_s1 = sshll.u32 %s168_s11, 4  ;;  %s165_s5 = scalar_lea.sflag [#allocation3], %s868_s28  ;;  %s178_s1 = int_to_ptr.vmem [resolvable:$true] %s177_s1 }
  0x26   : > { %526 = dma.hbm_to_vmem [thread:$0]  (!%p874_p0), %s176_s9, 128, %s178_s1, %s165_s5, %s777_s21, %s777_s21, %s778_s22  }
  0x27   : > { %s218_s2 = sshll.u32 %s216_s23, 4  ;;  %s220_s14 = sshll.u32 %s211_s26, 4  ;;  %s219_s2 = int_to_ptr.hbm [resolvable:$true] %s218_s2  ;;  %s221_s14 = int_to_ptr.vmem [resolvable:$true] %s220_s14 }
  0x28   : > { %532 = dma.hbm_to_vmem [thread:$0]  (!%p874_p0), %s219_s2, 32, %s221_s14, %s188_s19  }
  0x29   : > { %229 = sbr.rel (%p891_p3) target bundleno = 108 (0x6c), region = 32  ;;  %s910_s30 = sand.u32 (!%p891_p3), 1, %s759_s13  }
  0x2a   : > { %s503_s7 = sshll.u32 (!%p891_p3), %s910_s30, 3  ;;  %s232_s1 = scalar_lea.sflag (!%p891_p3), [#allocation3], %s910_s30 }
  0x2b   : > { %s235_s28 = scalar_lea.vmem (!%p891_p3), [#allocation2], %s503_s7 }
  0x2e   : > { %742 = dma.done.wait (%p850_p8), %s232_s1, 128  }
  0x2f   : > { %744 = vsyncadd (%p850_p8), %s232_s1, 4294967168  ;;  %s241_s2 = sand.u32 1, %s830_s18   ;;  %s504_s14 = sshll.u32 %s910_s30, 1 }
  0x30   : > { %s242_s20 = scalar_lea.sflag [#allocation6], %s241_s2  ;;  %s245_s26 = scalar_lea.vmem [#allocation5], %s504_s14 }
  0x31   : > { %746 = dma.done.wait (%p850_p8), %s242_s20, 64  }
  0x32   : > { %748 = vsyncadd (%p850_p8), %s242_s20, 4294967232  ;;  %v290_v0 = vld [vmem:[%s235_s28] sm:$0x3]  ;;  %v507_v1 = vld [vmem:[%s235_s28 + $0x2] sm:$0x3]  ;;  %s255_s18 = scalar_lea.vmem [#allocation7], %s504_s14  ;;  %v342_v38 = vlaneseq }
  0x33   : > { %v295_v2 = vmax.f32 %v290_v0, %v507_v1  ;;  %v508_v3 = vld [vmem:[%s235_s28 + $0x4] sm:$0x3]  ;;  %v509_v4 = vld [vmem:[%s235_s28 + $0x6] sm:$0x3]  ;;  %v289_v17 = vld [vmem:[%s245_s26] sm:$0x3] }
  0x34   : > { %vm291_vm0 = vcmp.eq.s32.totalorder %v289_v17, 0  ;;  %vm296_vm1 = vcmp.eq.s32.totalorder %v289_v17, 1  ;;  %vm301_vm2 = vcmp.eq.s32.totalorder %v289_v17, 2  ;;  %v328_v25 = vld [vmem:[%s255_s18] sm:$0x3]  ;;  %vm306_vm3 = vcmp.eq.s32.totalorder %v289_v17, 3 }
  0x35   : > { %v300_v5 = vmax.f32 %v295_v2, %v508_v3  ;;  %v292_v23 = vsel %vm291_vm0, %v290_v0, 0.0  ;;  %v329_v27 = vadd.f32 1.0, %v328_v25  ;;  %vm330_vm4 = vcmp.ne.s32.totalorder %v289_v17, 255  ;;  %s511_s24 = sshll.u32 %s767_s15, 3  ;;  %s288_s6 = scalar_lea.vmem [#allocation8], %s503_s7 }
  0x36   : > { %v297_v24 = vsel %vm296_vm1, %v507_v1, %v292_v23  ;;  %vm334_vm5 = vcmask 1041408   ;;  %v343_v41 = vshrl.u32 %v342_v38, 7  ;;  %s360_s23 = scalar_lea.hbm %s973_s3, %s511_s24  ;;  %s362_s8 = sshll.u32 %s288_s6, 4  ;;  %s363_s8 = int_to_ptr.vmem [resolvable:$true] %s362_s8 }
  0x37   : > { %v305_v6 = vmax.f32 %v300_v5, %v509_v4  ;;  %v302_v26 = vsel %vm301_vm2, %v508_v3, %v297_v24  ;;  %v331_v32 = vmul.f32 %v329_v27, %v329_v27  ;;  %s364_s10 = sshll.u32 %s360_s23, 4  ;;  %s349_s15 = scalar_lea.sflag [#allocation4], %s910_s30  ;;  %s365_s10 = int_to_ptr.hbm [resolvable:$true] %s364_s10 }
  0x38   : > { %v307_v30 = vsel %vm306_vm3, %v509_v4, %v302_v26  ;;  %vm344_vm6 = vcmp.eq.s32.totalorder %v343_v41, 0  ;;  %s703_s29 = sshra.s32 %s365_s10, 4  ;;  %s709_s21 = scalar_lea.hbm %s973_s3, 16  ;;  %s704_s29 = int_to_ptr.hbm [resolvable:$true] %s703_s29 }
  0x39   : > { %v308_v7 = vsub.f32 %v290_v0, %v305_v6  ;;  %v312_v8 = vsub.f32 %v507_v1, %v305_v6  ;;  %v316_v9 = vsub.f32 %v508_v3, %v305_v6  ;;  %v320_v10 = vsub.f32 %v509_v4, %v305_v6  ;;  %s705_s9 = scalar_lea.hbm %s704_s29, 8  ;;  %p710_p7 = scmp.lt.s32.totalorder %s704_s29, %s973_s3 }
  0x3a   : > { %p706_p4 = scmp.ne.s32.totalorder %s704_s29, %s705_s9  ;;  %p711_p8 = scmp.lt.s32.totalorder %s709_s21, %s705_s9 }
  0x3b   : > { %v309_v11 = vmul.f32 1.442695, %v308_v7  ;;  %v313_v12 = vmul.f32 1.442695, %v312_v8  ;;  %v317_v13 = vmul.f32 1.442695, %v316_v9 }
  0x3c   : > { %v321_v14 = vmul.f32 1.442695, %v320_v10  ;;  %p707_p5 = pnand %p706_p4, %p854_p9  ;;  %p712_p10 = por %p711_p8, %p710_p7 }
  0x3d   : > { %589 = vpow2.f32 %v309_v11 }
  0x3e   : > { %591 = vpow2.f32 %v313_v12  ;;  %p708_p6 = pneg %p707_p5 }
  0x3f   : > { %593 = vpow2.f32 %v317_v13 }
  0x40   : > { %595 = vpow2.f32 %v321_v14  ;;  %p713_p13 = pnand %p712_p10, %p708_p6 }
  0x43   : > { %v590_v15 = vpop.eup %589 }
  0x44   : > { %v592_v16 = vpop.eup %591 }
  0x45   : > { %v594_v18 = vpop.eup %593  ;;  %v315_v19 = vadd.f32 %v592_v16, %v590_v15 }
  0x46   : > { %v596_v20 = vpop.eup %595 }
  0x47   : > { %v319_v21 = vadd.f32 %v594_v18, %v315_v19 }
  0x49   : > { %v323_v22 = vadd.f32 %v596_v20, %v319_v21 }
  0x4b   : > { %597 = vlog2.f32 %v323_v22 }
  0x51   : > { %v598_v28 = vpop.eup %597 }
  0x52   : > { %v325_v29 = vmul.f32 0.6931472, %v598_v28 }
  0x54   : > { %v326_v31 = vadd.f32 %v325_v29, %v305_v6 }
  0x56   : > { %v327_v33 = vsub.f32 %v326_v31, %v307_v30 }
  0x58   : > { %v332_v34 = vmul.f32 %v331_v32, %v327_v33 }
  0x5a   : > { %v333_v35 = vsel %vm330_vm4, %v332_v34, 0.0 }
  0x5b   : > { %v335_v36 = vsel %vm334_vm5, %v333_v35, 0.0 }
  0x5c   : > { %v336_v37 = vrot.slane %v335_v36, 4 }
  0x5e   : > { %v337_v39 = vadd.f32 %v336_v37, %v335_v36 }
  0x60   : > { %v338_v40 = vrot.slane %v337_v39, 2 }
  0x62   : > { %v339_v42 = vadd.f32 %v338_v40, %v337_v39 }
  0x64   : > { %v340_v43 = vrot.slane %v339_v42, 1 }
  0x66   : > { %v341_v44 = vadd.f32 %v340_v43, %v339_v42 }
  0x68   : > { %v345_v45 = vsel %vm344_vm6, %v341_v44, 0.0 }
  0x69   : > { %347 = vst [vmem:[%s288_s6] sm:$0xff] %v345_v45 }
  0x6a   : > { %716 = shalt.err (!%p713_p13)
}
  0x6b   : > { %521 = dma.vmem_to_hbm [thread:$0]  (%p854_p9), %s363_s8, 128, %s365_s10, %s349_s15  }
  0x6c PF: > { %s376_s30 = sand.u32 1, %s755_s12   ;;  %p534_p0 = pnand %p494_p12, %p861_p11 }
  0x6d   : > { %s377_s1 = scalar_lea.sflag [#allocation4], %s376_s30 }
  0x6e   : > { %p535_p1 = pneg %p534_p0 }
  0x70   : > { %750 = dma.done.wait (%p535_p1), %s377_s1, 128  }
  0x71   : > { %752 = vsyncadd (%p535_p1), %s377_s1, 4294967168  ;;  %s22_s17 = sadd.s32 1, %s775_s17   ;;  %s991_s28 = sld [smem:[#allocation12_spill]] }
  0x72   : > { %p19_p2 = scmp.ge.s32.totalorder %s22_s17, 4   ;;  %s992_s14 = sld [smem:[#allocation14_spill]] }
  0x73   : > { %s993_s25 = sld [smem:[#allocation13_spill]]  ;;  %s994_s12 = smov %s759_s13 }
  0x74   : > { %s996_s15 = smov %s771_s16 }
  0x75   :  { %21 = sbr.rel (!%p19_p2) target bundleno = 11 (0xb), region = 104 }
  0x77   : > { %s995_s13 = smov %s991_s28 }
  0x79   : > { %s997_s16 = smov %s993_s25 }
  0x7a   :  { %383 = vsyncpa [#allocation3], 1 }
  0x7b   :  { %385 = vsyncpa [#allocation3 + $0x1], 1 }
  0x7c   :  { %386 = vsyncpa [#allocation6], 1 }
  0x7d   :  { %388 = vsyncpa [#allocation6 + $0x1], 1 }
  0x7e   :  { %389 = vsyncpa [#allocation4], 1 }
  0x7f   :  { %391 = vsyncpa [#allocation4 + $0x1], 1 }

</bundles_post_ra>
